<compile_context>
chip_gen: v6e
topology: v6e:2x2x1
jax: 0.10.0
libtpu: 0.0.40
codegen_flags: <defaults>
</compile_context>

<pallas_src>
import jax
import jax.numpy as jnp
from jax import lax
from jax.experimental import pallas as pl
from jax.experimental.pallas import tpu as pltpu

_MIB = 1024 * 1024


def _vmem_capacity_bytes():
    """Generation-aware VMEM capacity (v5e/v6e: 128 MiB, v7x: 64 MiB per TC).
    Falls back to the smallest value (v7x) if the query is unavailable so the
    derived budgets are always safe."""
    try:
        cap = int(getattr(pltpu.get_tpu_info(), "vmem_capacity_bytes", 0) or 0)
        if cap > 0:
            return cap
    except Exception:
        pass
    return 64 * _MIB


# ---------------------------------------------------------------------------
# Kernel 1: pairwise distances D[k, b] = KL(N(mu_b, sig_b) || N(mu_k, sig_k)),
# summed over the latent dim, as a single 2L-deep MXU contraction, tiled over
# the batch axis with a "parallel" grid.
# ---------------------------------------------------------------------------
def _kl_dists_kernel(mu_ref, logsig_ref, on_mu_ref, on_sig_ref, d_ref):
    mu1 = mu_ref[...].astype(jnp.float32)          # (tb, L)
    logsig1 = logsig_ref[...].astype(jnp.float32)  # (tb, L)
    mu2 = on_mu_ref[...].astype(jnp.float32)       # (K, L)
    sig2 = on_sig_ref[...].astype(jnp.float32)     # (K, L)

    L = mu1.shape[1]
    sig1_sq = jnp.exp(2.0 * logsig1)               # input_sig ** 2
    inv2 = 0.5 / (sig2 * sig2)                     # 1 / (2 sig2^2)

    # KL = sum_l [ log sig2 - log sig1 + (sig1^2 + (mu1 - mu2)^2) * inv2 - 1/2 ]
    #    = c_k + d_b + [ inv2 | -2*mu2*inv2 ] . [ sig1^2 + mu1^2 | mu1 ]^T
    # NOTE: the expanded square can cancel for nearly-identical large means;
    # it is the price of doing the whole distance as ONE 2L-deep contraction
    # (2L = 256 exactly fills the v6e/v7x MXU when latent_dim = 128).
    c_k = jnp.sum(jnp.log(sig2) + mu2 * mu2 * inv2, axis=1, keepdims=True) - 0.5 * L  # (K, 1)
    d_b = -jnp.sum(logsig1, axis=1)                                                   # (tb,)

    lhs = jnp.concatenate([inv2, -2.0 * mu2 * inv2], axis=1)        # (K, 2L)
    rhs = jnp.concatenate([sig1_sq + mu1 * mu1, mu1], axis=1)       # (tb, 2L)
    dn = (((1,), (1,)), ((), ()))                                   # contract the 2L axis
    quad = lax.dot_general(lhs, rhs, dn, preferred_element_type=jnp.float32)  # (K, tb)

    d_ref[...] = quad + c_k + d_b[None, :]


def _dist_tile_bytes(tb, L, K):
    """Conservative per-tile VMEM estimate for the distance kernel."""
    return 4 * (tb * (4 * L        # mu + logsig blocks, x2 pipeline buffers
                      + 4 * L      # concat'd RHS + elementwise intermediates
                      + 4 * K)     # (K, tb) output x2 buffers + matmul result
                + 4 * K * L)       # on_mu / on_sig + concat'd LHS


def _pick_tile_b(B, L, K, budget_bytes, min_tiles=2):
    """Output block is (K, tb) with tb on the lane axis, so tb must be a
    multiple of 128 that divides B, or the full batch.  Prefer >=2 tiles (v7x
    dual-TensorCore) when legal; if even the minimum tile exceeds the budget,
    return it anyway and let the caller raise vmem_limit_bytes."""
    if B % 128 != 0:
        return B
    max_tb = B
    if min_tiles > 1 and B >= 128 * min_tiles:
        max_tb = ((B // min_tiles) // 128) * 128
    best = 128
    for d in range(128, max_tb + 1, 128):
        if B % d == 0 and _dist_tile_bytes(d, L, K) <= budget_bytes:
            best = d
    return best


def pairwise_dists(input_mu, input_logsig, on_mu, on_sig, tile_b=None):
    B, L = input_mu.shape
    K = on_mu.shape[0]
    vmem_cap = _vmem_capacity_bytes()
    tb = _pick_tile_b(B, L, K, vmem_cap // 6) if tile_b is None else tile_b
    assert B % tb == 0, (B, tb)
    num_tiles = B // tb
    base_limit = min(48 * _MIB, vmem_cap // 2)           # 48 MiB v5e/v6e, 32 MiB v7x
    vmem_limit = int(min(vmem_cap * 3 // 4,
                         max(base_limit, _dist_tile_bytes(tb, L, K) + 8 * _MIB)))
    return pl.pallas_call(
        _kl_dists_kernel,
        out_shape=jax.ShapeDtypeStruct((K, B), jnp.float32),
        grid=(num_tiles,),
        in_specs=[
            pl.BlockSpec((tb, L), lambda i: (i, 0)),
            pl.BlockSpec((tb, L), lambda i: (i, 0)),
            pl.BlockSpec((K, L), lambda i: (0, 0)),
            pl.BlockSpec((K, L), lambda i: (0, 0)),
        ],
        out_specs=pl.BlockSpec((K, tb), lambda i: (0, i)),
        compiler_params=pltpu.CompilerParams(
            dimension_semantics=("parallel",),
            vmem_limit_bytes=vmem_limit),
    )(input_mu, input_logsig, on_mu, on_sig)


# ---------------------------------------------------------------------------
# Hoisted softmin prep (once per forward, O(B*K) work): per-group soft weights,
# group distances, ps = softmin over the batch dim, and ps expanded to states.
# Done as a tiny XLA op between the two pallas_calls, per the perf review.
# ---------------------------------------------------------------------------
def _softmin(x, axis):
    # numerically-stable softmax(-x, axis) == F.softmin(x, axis)
    m = jnp.min(x, axis=axis, keepdims=True)
    e = jnp.exp(m - x)
    return e / jnp.sum(e, axis=axis, keepdims=True)


def _softmin_prep(dists_bk, n_states):
    B, K = dists_bk.shape
    G = K // n_states
    d3 = dists_bk.reshape(B, G, n_states)
    softs3 = _softmin(d3, axis=2)                       # within-group softmin
    softs = softs3.reshape(B, K)                        # (B, K)
    gdists = jnp.sum(softs3 * d3, axis=2)               # (B, G)
    ps = _softmin(gdists, axis=0)                       # softmin over the batch dim
    dist = jnp.sum(gdists * ps, axis=1)                 # (B,)
    # ws[b, g*n + j] = ps[b, g]  (single broadcast + reshape; no lane concats)
    ws = jnp.broadcast_to(ps[:, :, None], (B, G, n_states)).reshape(B, K)
    return softs, ws, gdists, dist


# ---------------------------------------------------------------------------
# Kernel 2: softmin mixing.  One shared-RHS MXU contraction per tile produces
# both quantised mu and sigma; outputs are lane-dense (B*B, L) slabs tiled over
# their leading axis with a "parallel" grid.
# ---------------------------------------------------------------------------
def _mix_kernel(softs_ref, ws_ref, on_cat_ref, qmu_ref, qsig_ref):
    softs_c = softs_ref[...].astype(jnp.float32)   # (tc, K)  this tile's rows
    ws = ws_ref[...].astype(jnp.float32)           # (B, K)   ps expanded to states
    on_cat = on_cat_ref[...].astype(jnp.float32)   # (K, 2L)  [on_mu | on_sig]
    tc, K = softs_c.shape
    B = ws.shape[0]
    L = on_cat.shape[1] // 2

    # w[(c*B + b), k] = softs_c[c, k] * ps[b, group(k)]
    w2 = (softs_c[:, None, :] * ws[None, :, :]).reshape(tc * B, K)
    # ONE (tc*B, K) @ (K, 2L) contraction: RHS pushed once, both outputs at once.
    qcat = jnp.dot(w2, on_cat, preferred_element_type=jnp.float32)   # (tc*B, 2L)
    qmu_ref[...] = qcat[:, :L].astype(qmu_ref.dtype)
    qsig_ref[...] = qcat[:, L:].astype(qsig_ref.dtype)


def _mix_tile_bytes(tc, B, L, K):
    """Per-tile VMEM estimate: the two (tc*B, L) output blocks (x2 pipeline
    buffers) plus the w2 / qcat / split intermediates (f32, conservative)."""
    return 4 * tc * B * (4 * L      # qmu + qsig output blocks, double-buffered
                         + 2 * L    # (tc*B, 2L) matmul result
                         + 2 * L    # the two lane-slice copies
                         + 2 * K)   # w2 + its 3-D source


def _pick_tile_c(B, L, K, budget_bytes, min_tiles=2):
    """Largest legal leading-axis tile under the VMEM budget.

    Legal tiles: tc == B, or tc a multiple of 8 dividing B (the (tc, K) softs
    block puts tc on the sublane axis).  The minimum legal tile is 8, so if
    even tc=8 exceeds the budget we still return 8 and the caller raises
    vmem_limit_bytes to cover it (fix for the old silent-overshoot bug).
    min_tiles >= 2 keeps at least two grid steps so the "parallel" axis can be
    sharded across v7x's two TensorCores; the extra grid step costs ~0.35us on
    single-TC v5e/v6e, negligible next to the (B,B,L) writeback."""
    if B % 8 != 0:
        return B                      # only the full-array block is legal
    max_tc = B
    if min_tiles > 1 and B >= 8 * min_tiles:
        max_tc = ((B // min_tiles) // 8) * 8
    best = 8
    for d in range(8, max_tc + 1, 8):
        if B % d == 0 and _mix_tile_bytes(d, B, L, K) <= budget_bytes:
            best = d
    return best


def softmin_mix(softs, ws, on_cat, *, tile_c=None, out_dtype=jnp.float32):
    B, K = softs.shape
    L = on_cat.shape[1] // 2
    vmem_cap = _vmem_capacity_bytes()
    tile_budget = vmem_cap // 6        # ~10.6 MiB on v7x (64 MiB), ~21 MiB on v5e/v6e
    tc = _pick_tile_c(B, L, K, tile_budget) if tile_c is None else tile_c
    assert B % tc == 0 and (tc == B or tc % 8 == 0), (B, tc)
    num_tiles = B // tc
    per_tile = _mix_tile_bytes(tc, B, L, K)
    base_limit = min(48 * _MIB, vmem_cap // 2)          # 48 MiB v5e/v6e, 32 MiB v7x
    vmem_limit = int(min(vmem_cap * 3 // 4, max(base_limit, per_tile + 8 * _MIB)))

    qmu_flat, qsig_flat = pl.pallas_call(
        _mix_kernel,
        out_shape=(
            jax.ShapeDtypeStruct((B * B, L), out_dtype),
            jax.ShapeDtypeStruct((B * B, L), out_dtype),
        ),
        grid=(num_tiles,),
        in_specs=[
            pl.BlockSpec((tc, K), lambda i: (i, 0)),     # this tile's soft weights
            pl.BlockSpec((B, K), lambda i: (0, 0)),      # ps expanded to states
            pl.BlockSpec((K, 2 * L), lambda i: (0, 0)),  # [on_mu | on_sig]
        ],
        out_specs=(
            pl.BlockSpec((tc * B, L), lambda i: (i, 0)),
            pl.BlockSpec((tc * B, L), lambda i: (i, 0)),
        ),
        compiler_params=pltpu.CompilerParams(
            dimension_semantics=("parallel",),           # shards c-tiles across v7x's 2 TCs
            vmem_limit_bytes=vmem_limit),
    )(softs, ws, on_cat)
    # Free metadata-only reshapes to the torch (B, B, L) layout.
    return qmu_flat.reshape(B, B, L), qsig_flat.reshape(B, B, L)


# ---------------------------------------------------------------------------
# 'argmin' path: data-dependent argmin / gathers stay in plain JAX glue; the
# heavy pairwise-distance computation comes from the Pallas kernel.
# ---------------------------------------------------------------------------
def _argmin_path(dists_bk, on_states, n_states, y=None):
    B, K = dists_bk.shape
    G = K // n_states
    smu, ssig, gd = [], [], []
    for g in range(G):
        lo = g * n_states
        sub_d = dists_bk[:, lo:lo + n_states]                    # (B, n)
        mins = jnp.argmin(sub_d, axis=1)                         # (B,)
        sel = on_states[lo:lo + n_states][mins]                  # (B, L, 2)
        smu.append(sel[..., 0])
        ssig.append(sel[..., 1])
        gd.append(jnp.take_along_axis(sub_d, mins[:, None], axis=1)[:, 0])
    states_mu = jnp.stack(smu, axis=1)                           # (B, G, L)
    states_sig = jnp.stack(ssig, axis=1)
    gdists = jnp.stack(gd, axis=1)                               # (B, G)
    ind = jnp.argmin(gdists, axis=1) if y is None else y
    bidx = jnp.arange(B)
    qmu = states_mu[bidx, ind]
    qsig = states_sig[bidx, ind]
    dist = jnp.take_along_axis(gdists, ind[:, None], axis=1)     # (B, 1) as in torch
    return (qmu, qsig), gdists, dist


# ---------------------------------------------------------------------------
# Full forward (matches quantiser.forward semantics)
# ---------------------------------------------------------------------------
def quantiser_forward(input_mu, input_logsig, on_states, mode, n_states=1, y=None,
                      tile_c=None, out_dtype=jnp.float32):
    assert mode in ('softmin', 'argmin')
    B = input_mu.shape[0]
    K = on_states.shape[0]
    assert K % n_states == 0
    on_mu = on_states[..., 0]
    on_sig = on_states[..., 1]

    d_kb = pairwise_dists(input_mu, input_logsig, on_mu, on_sig)   # (K, B), Pallas
    # torch: dists = torch.stack(dists).view(input_mu.size(0), -1)
    # Row-major reshape of the (K, B) stack (NOT a transpose) -- kept
    # bug-for-bug as a ~K*B*4-byte XLA reshape between the two pallas_calls.
    dists_bk = d_kb.reshape(B, K)

    if mode == 'argmin':
        return _argmin_path(dists_bk, on_states, n_states, y)

    # Hoisted once-per-forward softmin prep (review item: no longer recomputed
    # per tile inside the hot kernel).
    softs, ws, gdists, dist = _softmin_prep(dists_bk, n_states)
    on_cat = jnp.concatenate([on_mu, on_sig], axis=1).astype(jnp.float32)  # (K, 2L)
    qmu, qsig = softmin_mix(softs, ws, on_cat, tile_c=tile_c, out_dtype=out_dtype)
    return (qmu, qsig), gdists, dist                    # dist: (B,), as in torch softmin


# ---------------------------------------------------------------------------
# Pure-JAX transcription of the PyTorch forward, used as a numerics reference.
# ---------------------------------------------------------------------------
def _kl_metric(mu1, sig1, mu2, sig2):
    return jnp.sum(jnp.log(sig2) - jnp.log(sig1)
                   + (sig1 ** 2 + (mu1 - mu2) ** 2) / (2.0 * sig2 ** 2) - 0.5, axis=1)


def reference_forward(input_mu, input_logsig, on_states, mode, n_states=1, y=None):
    B = input_mu.shape[0]
    K = on_states.shape[0]
    input_sig = jnp.exp(input_logsig)
    dlist = [_kl_metric(input_mu, input_sig, on_states[i, :, 0], on_states[i, :, 1])
             for i in range(K)]
    dists = jnp.stack(dlist).reshape(B, -1)               # torch .view(B, -1)
    _dists, states = [], []
    for i in range(0, K, n_states):
        sub_states = on_states[i:i + n_states]
        sub_d = dists[:, i:i + n_states]
        if mode == 'argmin':
            mins = jnp.argmin(sub_d, axis=1)
            _states = sub_states[mins]
            _dists.append(jnp.take_along_axis(sub_d, mins[:, None], axis=1)[:, 0])
        else:
            softs = jax.nn.softmax(-sub_d, axis=1)
            _states = jnp.einsum('bn,nlc->blc', softs, sub_states)
            _dists.append(jnp.sum(softs * sub_d, axis=1))
        states.append(_states)
    states = jnp.stack(states, axis=1)                    # (B, G, L, 2)
    gdists = jnp.stack(_dists, axis=1)                    # (B, G)
    if mode == 'argmin':
        ind = jnp.argmin(gdists, axis=1) if y is None else y
        bidx = jnp.arange(B)
        qmu = states[bidx, ind, :, 0]
        qsig = states[bidx, ind, :, 1]
        dist = jnp.take_along_axis(gdists, ind[:, None], axis=1)
    else:
        ps = jax.nn.softmax(-gdists, axis=0)
        qmu = jnp.einsum('bg,cgl->cbl', ps, states[..., 0])
        qsig = jnp.einsum('bg,cgl->cbl', ps, states[..., 1])
        dist = jnp.sum(gdists * ps, axis=1)
    return (qmu, qsig), gdists, dist


if __name__ == "__main__":
    B, L = 32, 128                      # batch, latent_dim
    num_on_states, n_states = 4, 2
    K = num_on_states * n_states

    key = jax.random.PRNGKey(0)
    k1, k2, k3, k4 = jax.random.split(key, 4)

    # Parameters in the quantiser.__init__ layout (K, L, 2); modest scales keep
    # the f32 self-check meaningful (softmin exponentiates the distances).
    on_mus = jax.random.normal(k1, (K, L), jnp.float32)
    on_sigs = jnp.exp(jax.random.normal(k2, (K, L), jnp.float32) * 0.25)
    on_states = jnp.stack([on_mus, on_sigs], axis=-1)             # (K, L, 2)

    input_mu = jax.random.normal(k3, (B, L), jnp.float32) * 0.5
    input_logsig = jax.random.normal(k4, (B, L), jnp.float32) * 0.25

    # Auto tile selection: B=32 -> tc=16 (2 grid steps, exercises the parallel grid).
    (qmu_s, qsig_s), gdists_s, dist_s = quantiser_forward(
        input_mu, input_logsig, on_states, mode='softmin', n_states=n_states)
    (qmu_a, qsig_a), gdists_a, dist_a = quantiser_forward(
        input_mu, input_logsig, on_states, mode='argmin', n_states=n_states)
    jax.block_until_ready((qmu_s, qsig_s, gdists_s, dist_s,
                           qmu_a, qsig_a, gdists_a, dist_a))

    # Numerics check against the pure-JAX transcription of the PyTorch forward.
    (rmu_s, rsig_s), rgd_s, rdist_s = reference_forward(
        input_mu, input_logsig, on_states, 'softmin', n_states)
    (_rmu_a, _rsig_a), rgd_a, rdist_a = reference_forward(
        input_mu, input_logsig, on_states, 'argmin', n_states)

    def close(a, b):
        return bool(jnp.allclose(a, b, rtol=1e-2, atol=1e-2))

    assert qmu_s.shape == (B, B, L) and qsig_s.shape == (B, B, L)
    assert gdists_s.shape == (B, num_on_states) and dist_s.shape == (B,)
    assert qmu_a.shape == (B, L) and qsig_a.shape == (B, L) and dist_a.shape == (B, 1)
    # Softmin path is continuous in the distances -> fully comparable; the
    # argmin-path quantised states are tie-sensitive, so compare its distances only.
    ok = [close(qmu_s, rmu_s), close(qsig_s, rsig_s), close(gdists_s, rgd_s),
          close(dist_s, rdist_s), close(gdists_a, rgd_a), close(dist_a, rdist_a)]
    assert all(ok), ok
    print("KERNEL_OK")
</pallas_src>

<mosaic_0001>
module attributes {stable_mosaic.version = 11 : i64} {
  func.func @_kl_dists_kernel(%arg0: i32, %arg1: memref<32x128xf32, #tpu.memory_space<vmem>>, %arg2: memref<32x128xf32, #tpu.memory_space<vmem>>, %arg3: memref<8x128xf32, #tpu.memory_space<vmem>>, %arg4: memref<8x128xf32, #tpu.memory_space<vmem>>, %arg5: memref<8x32xf32, #tpu.memory_space<vmem>>) attributes {dimension_semantics = [#tpu.dimension_semantics<parallel>], iteration_bounds = array<i64: 1>, scalar_prefetch = 0 : i64, scratch_operands = 0 : i64, tpu.core_type = #tpu.core_type<tc>, window_params = [{transform_indices = @transform_0, window_bounds = array<i64: 32, 128>}, {transform_indices = @transform_1, window_bounds = array<i64: 32, 128>}, {pipeline_mode = #tpu.pipeline_mode<synchronous>, transform_indices = @transform_2, window_bounds = array<i64: 8, 128>}, {pipeline_mode = #tpu.pipeline_mode<synchronous>, transform_indices = @transform_3, window_bounds = array<i64: 8, 128>}, {transform_indices = @transform_4, window_bounds = array<i64: 8, 32>}]} {
    %c0 = arith.constant 0 : index
    %c0_0 = arith.constant 0 : index
    %0 = vector.load %arg1[%c0, %c0_0] : memref<32x128xf32, #tpu.memory_space<vmem>>, vector<32x128xf32>
    %c0_1 = arith.constant 0 : index
    %c0_2 = arith.constant 0 : index
    %1 = vector.load %arg2[%c0_1, %c0_2] : memref<32x128xf32, #tpu.memory_space<vmem>>, vector<32x128xf32>
    %c0_3 = arith.constant 0 : index
    %c0_4 = arith.constant 0 : index
    %2 = vector.load %arg3[%c0_3, %c0_4] : memref<8x128xf32, #tpu.memory_space<vmem>>, vector<8x128xf32>
    %c0_5 = arith.constant 0 : index
    %c0_6 = arith.constant 0 : index
    %3 = vector.load %arg4[%c0_5, %c0_6] : memref<8x128xf32, #tpu.memory_space<vmem>>, vector<8x128xf32>
    %cst = arith.constant 2.000000e+00 : f32
    %4 = vector.broadcast %cst : f32 to vector<32x128xf32>
    %5 = arith.mulf %4, %1 : vector<32x128xf32>
    %6 = math.exp %5 : vector<32x128xf32>
    %7 = arith.mulf %3, %3 : vector<8x128xf32>
    %cst_7 = arith.constant 5.000000e-01 : f32
    %8 = vector.broadcast %cst_7 : f32 to vector<8x128xf32>
    %9 = arith.divf %8, %7 : vector<8x128xf32>
    %10 = math.log %3 : vector<8x128xf32>
    %11 = arith.mulf %2, %2 : vector<8x128xf32>
    %12 = arith.mulf %11, %9 : vector<8x128xf32>
    %13 = arith.addf %10, %12 : vector<8x128xf32>
    %cst_8 = arith.constant dense<0.000000e+00> : vector<8xf32>
    %14 = vector.multi_reduction <add>, %13, %cst_8 [1] : vector<8x128xf32> to vector<8xf32>
    %15 = vector.shape_cast %14 : vector<8xf32> to vector<8x1xf32>
    %cst_9 = arith.constant 6.400000e+01 : f32
    %16 = vector.broadcast %cst_9 : f32 to vector<8x1xf32>
    %17 = arith.subf %15, %16 : vector<8x1xf32>
    %cst_10 = arith.constant dense<0.000000e+00> : vector<32xf32>
    %18 = vector.multi_reduction <add>, %1, %cst_10 [1] : vector<32x128xf32> to vector<32xf32>
    %cst_11 = arith.constant 0.000000e+00 : f32
    %19 = vector.broadcast %cst_11 : f32 to vector<32xf32>
    %20 = arith.subf %19, %18 : vector<32xf32>
    %cst_12 = arith.constant -2.000000e+00 : f32
    %21 = vector.broadcast %cst_12 : f32 to vector<8x128xf32>
    %22 = arith.mulf %21, %2 : vector<8x128xf32>
    %23 = arith.mulf %22, %9 : vector<8x128xf32>
    %24 = tpu.concatenate %9, %23 in 1 : vector<8x128xf32>, vector<8x128xf32> -> vector<8x256xf32>
    %25 = arith.mulf %0, %0 : vector<32x128xf32>
    %26 = arith.addf %6, %25 : vector<32x128xf32>
    %27 = tpu.concatenate %26, %0 in 1 : vector<32x128xf32>, vector<32x128xf32> -> vector<32x256xf32>
    %cst_13 = arith.constant dense<0.000000e+00> : vector<8x32xf32>
    %28 = tpu.matmul %24, %27, %cst_13 {dimension_numbers = #tpu.dot_dimension_numbers<[1], [1], [0], [0], [0, 0, 1, 0], [], []>} : vector<8x256xf32>, vector<32x256xf32>, vector<8x32xf32> -> vector<8x32xf32>
    %29 = vector.broadcast %17 : vector<8x1xf32> to vector<8x32xf32>
    %30 = arith.addf %28, %29 : vector<8x32xf32>
    %31 = vector.shape_cast %20 : vector<32xf32> to vector<1x32xf32>
    %32 = vector.broadcast %31 : vector<1x32xf32> to vector<8x32xf32>
    %33 = arith.addf %30, %32 : vector<8x32xf32>
    %c0_14 = arith.constant 0 : index
    %c0_15 = arith.constant 0 : index
    %34 = vector.load %arg5[%c0_14, %c0_15] : memref<8x32xf32, #tpu.memory_space<vmem>>, vector<8x32xf32>
    tpu.vector_store %arg5[%c0_14, %c0_15], %33 {strides = array<i32>} : memref<8x32xf32, #tpu.memory_space<vmem>>, vector<8x32xf32>,
    return
  }
  func.func @transform_0(%arg0: i32) -> (i32, i32) {
    %c0_i32 = arith.constant 0 : i32
    %c0_i32_0 = arith.constant 0 : i32
    return %arg0, %c0_i32 : i32, i32
  }
  func.func @transform_1(%arg0: i32) -> (i32, i32) {
    %c0_i32 = arith.constant 0 : i32
    %c0_i32_0 = arith.constant 0 : i32
    return %arg0, %c0_i32 : i32, i32
  }
  func.func @transform_2(%arg0: i32) -> (i32, i32) {
    %c0_i32 = arith.constant 0 : i32
    %c0_i32_0 = arith.constant 0 : i32
    %c0_i32_1 = arith.constant 0 : i32
    return %c0_i32, %c0_i32_0 : i32, i32
  }
  func.func @transform_3(%arg0: i32) -> (i32, i32) {
    %c0_i32 = arith.constant 0 : i32
    %c0_i32_0 = arith.constant 0 : i32
    %c0_i32_1 = arith.constant 0 : i32
    return %c0_i32, %c0_i32_0 : i32, i32
  }
  func.func @transform_4(%arg0: i32) -> (i32, i32) {
    %c0_i32 = arith.constant 0 : i32
    %c0_i32_0 = arith.constant 0 : i32
    return %c0_i32, %arg0 : i32, i32
  }
}

</mosaic_0001>

<bundles_post_ra>
// kernel: tpu_custom_call.1
= control target key start
LH: loop header
LB: loop body
LE: loop exit
PB: predicated region body
PF: predicated region fallthrough
CT: control target
= control target key end

     0   :  { %9 = vsyncpa [#allocation3], 0  ;;  %s433_s0 = inlined_call_operand.hbm [shape: f32[32,128], index: 0, kind: input, shape index: {}]   ;;  %s434_s1 = inlined_call_operand.hbm [shape: f32[32,128], index: 1, kind: input, shape index: {}]   ;;  %s435_s2 = inlined_call_operand.hbm [shape: f32[8,128], index: 2, kind: input, shape index: {}]   ;;  %s436_s3 = inlined_call_operand.hbm [shape: f32[8,128], index: 3, kind: input, shape index: {}]   ;;  %s437_s4 = inlined_call_operand.hbm [shape: f32[8,32], index: 4, kind: output, shape index: {}]  }
   0x1   :  { %10 = vsyncpa [#allocation6], 0 }
   0x2   :  { %11 = vsyncpa [#allocation9], 0 }
   0x3   :  { %12 = vsyncpa [#allocation4], 0  ;;  %s386_s15 = smov [#allocation5]   ;;  %s387_s17 = smov [#allocation2]  }
   0x4   :  { %s30_s16 = sshll.u32 %s386_s15, 4  ;;  %s18_s18 = sshll.u32 %s387_s17, 4  ;;  %s31_s16 = int_to_ptr.vmem [resolvable:$true] %s30_s16  ;;  %s19_s18 = int_to_ptr.vmem [resolvable:$true] %s18_s18 }
   0x5   :  { %s286_s19 = scalar_lea.vmem %s31_s16, 512  ;;  %p291_p1 = scmp.lt.s32.totalorder %s31_s16, %s31_s16 }
   0x6   :  { %p287_p0 = scmp.ne.s32.totalorder %s31_s16, %s286_s19  ;;  %p292_p2 = scmp.lt.s32.totalorder %s286_s19, %s286_s19 }
   0x8   :  { %p293_p3 = por %p292_p2, %p291_p1 }
   0xa   :  { %p294_p4 = pnand %p293_p3, %p287_p0 }
   0xc   :  { %297 = shalt.err (!%p294_p4)
}
   0xd   :  { %s388_s20 = smov 128   ;;  %s389_s21 = smov 8  }
   0xe   :  { %36 = dma.hbm_to_vmem [thread:$0]  %s434_s1, 512, %s31_s16, [#allocation6], %s388_s20, %s388_s20, %s389_s21  }
   0xf   :  { %s306_s24 = scalar_lea.vmem %s19_s18, 512  ;;  %p311_p6 = scmp.lt.s32.totalorder %s19_s18, %s19_s18 }
  0x10   :  { %p307_p5 = scmp.ne.s32.totalorder %s19_s18, %s306_s24  ;;  %p312_p7 = scmp.lt.s32.totalorder %s306_s24, %s306_s24 }
  0x12   :  { %p313_p8 = por %p312_p7, %p311_p6 }
  0x14   :  { %p314_p9 = pnand %p313_p8, %p307_p5 }
  0x16   :  { %317 = shalt.err (!%p314_p9)
}
  0x17   :  { %24 = dma.hbm_to_vmem [thread:$0]  %s433_s0, 512, %s19_s18, [#allocation3], %s388_s20, %s388_s20, %s389_s21  }
  0x18   :  { %s390_s27 = smov [#allocation7]   ;;  %s391_s29 = smov [#allocation8]  }
  0x19   :  { %s43_s28 = sshll.u32 %s390_s27, 4  ;;  %s53_s30 = sshll.u32 %s391_s29, 4  ;;  %s44_s28 = int_to_ptr.vmem [resolvable:$true] %s43_s28  ;;  %s54_s30 = int_to_ptr.vmem [resolvable:$true] %s53_s30 }
  0x1a   :  { %s326_s5 = scalar_lea.vmem %s44_s28, 128  ;;  %p331_p11 = scmp.lt.s32.totalorder %s44_s28, %s44_s28 }
  0x1b   :  { %p327_p10 = scmp.ne.s32.totalorder %s44_s28, %s326_s5  ;;  %p332_p12 = scmp.lt.s32.totalorder %s326_s5, %s326_s5 }
  0x1d   :  { %p333_p13 = por %p332_p12, %p331_p11 }
  0x1f   :  { %p334_p0 = pnand %p333_p13, %p327_p10 }
  0x21   :  { %337 = shalt.err (!%p334_p0)
}
  0x22   :  { %46 = dma.hbm_to_vmem [thread:$0]  %s435_s2, 128, %s44_s28, [#allocation6]  }
  0x23   :  { %s346_s7 = scalar_lea.vmem %s54_s30, 128  ;;  %p351_p2 = scmp.lt.s32.totalorder %s54_s30, %s54_s30 }
  0x24   :  { %p347_p1 = scmp.ne.s32.totalorder %s54_s30, %s346_s7  ;;  %p352_p3 = scmp.lt.s32.totalorder %s346_s7, %s346_s7 }
  0x26   :  { %p353_p4 = por %p352_p3, %p351_p2 }
  0x28   :  { %p354_p5 = pnand %p353_p4, %p347_p1 }
  0x2a   :  { %357 = shalt.err (!%p354_p5)
}
  0x2b   :  { %56 = dma.hbm_to_vmem [thread:$0]  %s436_s3, 128, %s54_s30, [#allocation9]  }
  0x2c   :  { %378 = dma.done.wait [#allocation3], 512  }
  0x2d   :  { %379 = vsyncadd [#allocation3], 4294966784 }
  0x2e   :  { %380 = dma.done.wait [#allocation6], 640  }
  0x2f   :  { %381 = vsyncadd [#allocation6], 4294966656 }
  0x30   :  { %382 = dma.done.wait [#allocation9], 128  }
  0x31   :  { %383 = vsyncadd [#allocation9], 4294967168  ;;  %v72_v0 = vld [vmem:[#allocation2 + $0x18] sm:$0xff]  ;;  %v75_v3 = vld [vmem:[#allocation5 + $0x10] sm:$0xff]  ;;  %v198_v40 = vlaneseq  ;;  %vm209_vm0 = vcmask 130112   ;;  %vm216_vm1 = vcmask 195712  }
  0x32   :  { %v76_v1 = vld [vmem:[#allocation5 + $0x18] sm:$0xff]  ;;  %148 = vmatprep.subr.mxu0 %v72_v0  ;;  %v74_v4 = vld [vmem:[#allocation5 + $0x8] sm:$0xff]  ;;  %v81_v5 = vmul.f32 2.0, %v75_v3  ;;  %v73_v7 = vld [vmem:[#allocation5] sm:$0xff]  ;;  %106 = vadd.xlane.f32.xlu1 %v75_v3  ;;  %v119_v16 = vmul.f32 %v72_v0, %v72_v0  ;;  %vm223_vm2 = vcmask 261312   ;;  %s392_s2 = smov [#allocation10]  }
  0x33   :  { %v82_v2 = vmul.f32 2.0, %v76_v1  ;;  %v80_v6 = vmul.f32 2.0, %v74_v4  ;;  %v78_v9 = vld [vmem:[#allocation8] sm:$0xff]  ;;  %102 = vadd.xlane.f32.xlu0 %v73_v7  ;;  %v79_v12 = vmul.f32 2.0, %v73_v7  ;;  %v71_v15 = vld [vmem:[#allocation2 + $0x10] sm:$0xff]  ;;  %v77_v20 = vld [vmem:[#allocation7] sm:$0xff] }
  0x34   :  { %v87_v10 = vmul.f32 1.442695, %v81_v5  ;;  %v91_v13 = vmul.f32 %v78_v9, %v78_v9  ;;  %v118_v17 = vmul.f32 %v71_v15, %v71_v15  ;;  %v70_v19 = vld [vmem:[#allocation2 + $0x8] sm:$0xff]  ;;  %v96_v26 = vmul.f32 %v77_v20, %v77_v20  ;;  %v69_v29 = vld [vmem:[#allocation2] sm:$0xff]  ;;  %s247_s3 = sshll.u32 %s392_s2, 4  ;;  %s248_s3 = int_to_ptr.vmem [resolvable:$true] %s247_s3 }
  0x35   :  { %v89_v8 = vmul.f32 1.442695, %v82_v2  ;;  %v85_v11 = vmul.f32 1.442695, %v80_v6  ;;  %v83_v14 = vmul.f32 1.442695, %v79_v12  ;;  %v117_v25 = vmul.f32 %v70_v19, %v70_v19  ;;  %p363_p7 = scmp.lt.s32.totalorder %s248_s3, %s248_s3 }
  0x36   :  { %108 = vadd.xlane.f32.xlu1 %v76_v1  ;;  %v114_v27 = vmul.f32 -2.0, %v77_v20  ;;  %v116_v34 = vmul.f32 %v69_v29, %v69_v29  ;;  %v199_v42 = vand.u32 127, %v198_v40  ;;  %v201_v43 = vshrl.u32 %v198_v40, 7  ;;  %s358_s9 = scalar_lea.vmem %s248_s3, 128 }
  0x37   :  { %266 = vpow2.f32 %v89_v8  ;;  %104 = vadd.xlane.f32.xlu0 %v74_v4  ;;  %vm239_vm3 = vcmask 261120   ;;  %p359_p6 = scmp.ne.s32.totalorder %s248_s3, %s358_s9  ;;  %p364_p8 = scmp.lt.s32.totalorder %s358_s9, %s358_s9 }
  0x38   :  { %268 = vpow2.f32 %v87_v10  ;;  %v204_v44 = vadd.s32 4294967288, %v199_v42  ;;  %v211_v47 = vadd.s32 4294967280, %v199_v42  ;;  %v202_v48 = vsub.s32 %v199_v42, %v201_v43 }
  0x39   :  { %270 = vpow2.f32 %v85_v11  ;;  %v218_v52 = vadd.s32 4294967272, %v199_v42  ;;  %p365_p9 = por %p364_p8, %p363_p7 }
  0x3a   :  { %272 = vrcp.f32 %v91_v13  ;;  %v207_v50 = vsub.s32 %v204_v44, %v201_v43  ;;  %v214_v53 = vsub.s32 %v211_v47, %v201_v43 }
  0x3b   :  { %274 = vlog2.f32 %v78_v9  ;;  %v221_v58 = vsub.s32 %v218_v52, %v201_v43  ;;  %p366_p10 = pnand %p365_p9, %p359_p6 }
  0x3c   :  { %276 = vpow2.f32 %v83_v14 }
  0x44   :  { %v267_v18 = vpop.eup %266 }
  0x45   :  { %v269_v21 = vpop.eup %268  ;;  %v123_v22 = vadd.f32 %v267_v18, %v119_v16 }
  0x46   :  { %v271_v23 = vpop.eup %270  ;;  %v122_v24 = vadd.f32 %v269_v21, %v118_v17 }
  0x47   :  { %149 = vmatpush1.xpose.msra.mxu0 %v123_v22  ;;  %v273_v28 = vpop.eup %272  ;;  %v121_v33 = vadd.f32 %v271_v23, %v117_v25 }
  0x48   :  { %150 = vmatprep.subr.mxu0 %v71_v15  ;;  %v275_v30 = vpop.eup %274  ;;  %v93_v31 = vmul.f32 0.5, %v273_v28 }
  0x49   :  { %v95_v32 = vmul.f32 0.6931472, %v275_v30  ;;  %v277_v37 = vpop.eup %276 }
  0x4a   :  { %v115_v35 = vmul.f32 %v114_v27, %v93_v31  ;;  %v97_v36 = vmul.f32 %v96_v26, %v93_v31  ;;  %v120_v39 = vadd.f32 %v277_v37, %v116_v34 }
  0x4b   :  { %151 = vmatpush1.xpose.msra.mxu0 %v122_v24 }
  0x4c   :  { %152 = vmatprep.subr.mxu0 %v70_v19  ;;  %188 = vmatprep.mubr.f32.mxu0 %v115_v35  ;;  %v98_v38 = vadd.f32 %v97_v36, %v95_v32 }
  0x4e   :  { %99 = vadd.xlane.f32.xlu0 %v98_v38 }
  0x4f   :  { %153 = vmatpush1.xpose.msra.mxu0 %v121_v33 }
  0x50   :  { %154 = vmatprep.subr.mxu0 %v69_v29 }
  0x53   :  { %155 = vmatpush1.xpose.msra.mxu0 %v120_v39 }
  0x56   :  { %189 = vmatmul.mubr.f32.vlgmr.msra.gmra.mxu0 %v93_v31 }
  0xbb   :  { %v107_v45 = vpop.xlane.xlu1 %106 }
  0xbc   :  { %v103_v41 = vpop.xlane.xlu0 %102  ;;  %v112_v54 = vsub.f32 0.0, %v107_v45 }
  0xbd   :  { %v110_v49 = vsub.f32 0.0, %v103_v41 }
  0xbe   :  { %v215_v61 = vrot.slane %v112_v54, %v214_v53 }
  0xbf   :  { %v109_v55 = vpop.xlane.xlu1 %108  ;;  %v203_v56 = vrot.slane %v110_v49, %v202_v48 }
  0xc0   :  { %v105_v46 = vpop.xlane.xlu0 %104  ;;  %v113_v59 = vsub.f32 0.0, %v109_v55 }
  0xc1   :  { %v111_v51 = vsub.f32 0.0, %v105_v46 }
  0xc2   :  { %v222_v0 = vrot.slane %v113_v59, %v221_v58 }
  0xc3   :  { %v208_v57 = vrot.slane %v111_v51, %v207_v50 }
  0xc5   :  { %v210_v62 = vsel %vm209_vm0, %v208_v57, %v203_v56 }
  0xc6   :  { %v217_v1 = vsel %vm216_vm1, %v215_v61, %v210_v62 }
  0xc7   :  { %v224_v4 = vsel %vm223_vm2, %v222_v0, %v217_v1 }
  0xd7   :  { %v100_v60 = vpop.xlane.xlu0 %99 }
  0xd8   :  { %v258_v63 = vadd.f32 -64.0, %v100_v60 }
 0x116   :  { %v190_v2 = vpop.f32.mrf.mxu0 }
 0x117   :  { %v191_v3 = vadd.f32 %v258_v63, %v190_v2 }
 0x118   :  { %v192_v5 = vpop.f32.mrf.mxu0 }
 0x119   :  { %v238_v6 = vadd.f32 %v224_v4, %v191_v3 }
 0x11b   :  { %240 = vst.msk [vmem:[#allocation10] sm:$0xff] %vm239_vm3, %v238_v6 }
 0x11c   :  { %369 = shalt.err (!%p366_p10)
}
 0x11d   :  { %250 = dma.vmem_to_hbm [thread:$0]  %s248_s3, 128, %s437_s4, [#allocation4]  }
 0x11e   :  { %384 = dma.done.wait [#allocation4], 128  }
 0x11f   :  { %385 = vsyncadd [#allocation4], 4294967168 }
 0x120   :  { %254 = vsyncpa [#allocation3], 1 }
 0x121   :  { %255 = vsyncpa [#allocation6], 1 }
 0x122   :  { %256 = vsyncpa [#allocation9], 1 }
 0x123   :  { %257 = vsyncpa [#allocation4], 1 }

</bundles_post_ra>
